<compile_context>
chip_gen: v7x
topology: tpu7x:2x2x1
jax: 0.10.0
libtpu: 0.0.40
codegen_flags: <defaults>
</compile_context>

<pallas_src>
import math

import jax
import jax.numpy as jnp
from jax.experimental import pallas as pl
from jax.experimental.pallas import tpu as pltpu


# 32 MiB scoped VMEM: raises v5e's 16 MiB default, comfortably inside v6e's
# 128 MiB and v7x's 64 MiB physical VMEM for our <=2 MiB double-buffered blocks.
_VMEM_LIMIT_BYTES = 32 * 1024 * 1024


def _round_up(x, m):
    return ((x + m - 1) // m) * m


def _cdiv(a, b):
    return -(-a // b)


def _choose_tiles(bc, hw, elt_bytes):
    """Pick (tile_bc, tile_hw, row_grp) for the streaming kernels."""
    sub = max(8, 32 // elt_bytes)                 # sublane packing: f32→8, bf16→16, int8→32
    tile_hw = min(_round_up(hw, 128), 2048)       # lane-dense, <=16 vreg chunks per row group
    quant = 32 if bc >= 32 else sub               # row quantum (32 = multiple of 8/16/32)
    budget = 2 << 20                              # ~2 MiB of x per block (>=85% of roofline)
    max_rows = max(quant, (budget // (tile_hw * elt_bytes)) // quant * quant)
    tile_bc = min(_round_up(bc, quant), max_rows, 256)
    # >=2 blocks along the (only) parallel axis of pass 1 when BC allows, so both
    # v7x TensorCores get work; the extra grid step is ~free on 1-TC v5e/v6e.
    if bc >= 2 * quant:
        tile_bc = min(tile_bc, _round_up(_cdiv(bc, 2), quant))
    row_grp = min(tile_bc, 32)                    # keeps f32 accumulators register-resident
    return tile_bc, tile_hw, row_grp


# ---------------- pass 1: per-(b,c) sum / sum-of-squares (lane-dense) ----------------

def _make_stats_kernel(hw, tile_bc, tile_hw, row_grp, n_hw):
    n_chunks = tile_hw // 128
    n_rg = tile_bc // row_grp
    hw_rem = hw % tile_hw                          # static: last HW tile is partial

    def kernel(x_ref, sum_ref, sq_ref):
        j = pl.program_id(1)                       # HW (reduction) axis, innermost

        if n_hw > 1:
            @pl.when(j == 0)
            def _():
                sum_ref[...] = jnp.zeros_like(sum_ref)
                sq_ref[...] = jnp.zeros_like(sq_ref)

        if hw_rem:
            lane = jax.lax.broadcasted_iota(jnp.int32, (row_grp, 128), 1)
            valid = hw - j * tile_hw               # columns still in-bounds for this step

        # Row groups keep the f32 accumulators in vregs; the lane-chunk loop is a
        # static unroll of pure VPU adds — no XLU cross-lane reduce, no 1-lane
        # masked stores.  OOB rows of a partial last BC block are accumulated as
        # garbage but dropped when the partial output block is written back.
        for r in range(n_rg):
            rows = slice(r * row_grp, (r + 1) * row_grp)
            s = jnp.zeros((row_grp, 128), jnp.float32)
            q = jnp.zeros((row_grp, 128), jnp.float32)
            for k in range(n_chunks):
                c = x_ref[rows, k * 128:(k + 1) * 128].astype(jnp.float32)
                if hw_rem:                         # mask OOB lanes of the edge tile
                    c = jnp.where(lane < valid - k * 128, c, 0.0)
                s = s + c
                q = q + c * c
            if n_hw > 1:
                sum_ref[rows, :] += s
                sq_ref[rows, :] += q
            else:
                sum_ref[rows, :] = s
                sq_ref[rows, :] = q

    return kernel


# ---------------- pass 2: out = x * weight[b, c] ----------------

def _reweight_kernel(w_ref, x_ref, o_ref):
    # Multiply in the input dtype (no whole-tile upcast); w broadcasts over lanes.
    o_ref[...] = x_ref[...] * w_ref[...].astype(x_ref.dtype)


# ---------------- wrapper ----------------

def channel_reweight(x, params):
    """x: [B, C, H, W].  params: dict of module parameters (see init_params)."""
    B, C, H, W = x.shape
    BC, HW = B * C, H * W
    elt = x.dtype.itemsize
    tile_bc, tile_hw, row_grp = _choose_tiles(BC, HW, elt)
    n_bc, n_hw = _cdiv(BC, tile_bc), _cdiv(HW, tile_hw)

    x2 = x.reshape(BC, HW)                         # metadata-only view, no HBM copy

    # ---- pass 1: streaming lane-dense sum / sum-of-squares ----
    sum128, sq128 = pl.pallas_call(
        _make_stats_kernel(HW, tile_bc, tile_hw, row_grp, n_hw),
        out_shape=(jax.ShapeDtypeStruct((BC, 128), jnp.float32),
                   jax.ShapeDtypeStruct((BC, 128), jnp.float32)),
        grid=(n_bc, n_hw),
        in_specs=[pl.BlockSpec((tile_bc, tile_hw), lambda i, j: (i, j))],
        out_specs=(pl.BlockSpec((tile_bc, 128), lambda i, j: (i, 0)),
                   pl.BlockSpec((tile_bc, 128), lambda i, j: (i, 0))),
        compiler_params=pltpu.CompilerParams(
            dimension_semantics=("parallel", "arbitrary"),
            vmem_limit_bytes=_VMEM_LIMIT_BYTES),
        cost_estimate=pl.CostEstimate(
            flops=int(3 * BC * HW), transcendentals=0,
            bytes_accessed=int(BC * HW * elt + 2 * BC * 128 * 4)),
    )(x2)

    # Single cross-lane reduce on the tiny lane-dense partials (plain XLA).
    sums = jnp.sum(sum128, axis=1)                 # [BC]
    sqs = jnp.sum(sq128, axis=1)                   # [BC]

    # ---- tiny BN + MLP head on [B, 2C] stats (plain XLA; O(B*2C), never the bottleneck) ----
    mean = sums / jnp.float32(HW)
    # One-pass unbiased variance (NaN/inf if H*W == 1, same as torch.std).
    var = jnp.maximum(sqs - sums * mean, 0.0) / jnp.float32(HW - 1)
    std = jnp.sqrt(var)
    stats = jnp.concatenate([mean.reshape(B, C), std.reshape(B, C)], axis=1)  # [B, 2C]
    bmean = jnp.mean(stats, axis=0)
    bvar = jnp.mean((stats - bmean) ** 2, axis=0)  # biased (BN train mode)
    h = (stats - bmean) * jax.lax.rsqrt(bvar + 1e-5) * params["bn_gamma"] + params["bn_beta"]
    h = h @ params["W1"].T + params["b1"]                          # Linear(2C, 64)
    h = jnp.where(h > 0, h, params["prelu_a"] * h)                 # PReLU
    h = h @ params["W2"].T + params["b2"]                          # Linear(64, C)
    w = jnp.where(h > 20.0, h, jnp.log1p(jnp.exp(jnp.minimum(h, 20.0))))  # Softplus

    # ---- pass 2: streaming broadcast multiply, lane-dense blocks ----
    w2 = w.reshape(BC, 1).astype(jnp.float32)
    out2 = pl.pallas_call(
        _reweight_kernel,
        out_shape=jax.ShapeDtypeStruct((BC, HW), x.dtype),
        grid=(n_bc, n_hw),
        in_specs=[pl.BlockSpec((tile_bc, 1), lambda i, j: (i, 0)),
                  pl.BlockSpec((tile_bc, tile_hw), lambda i, j: (i, j))],
        out_specs=pl.BlockSpec((tile_bc, tile_hw), lambda i, j: (i, j)),
        compiler_params=pltpu.CompilerParams(
            dimension_semantics=("parallel", "parallel"),
            vmem_limit_bytes=_VMEM_LIMIT_BYTES),
        cost_estimate=pl.CostEstimate(
            flops=int(BC * HW), transcendentals=0,
            bytes_accessed=int(2 * BC * HW * elt + BC * 4)),
    )(w2, x2)

    return out2.reshape(B, C, H, W)


# ---------------- parameters & reference ----------------

def init_params(key, features):
    """Deterministic synthetic init matching the PyTorch module's shapes."""
    f2 = 2 * features
    k1, k2, k3, k4 = jax.random.split(key, 4)
    bound1 = 1.0 / math.sqrt(f2)
    bound2 = 1.0 / math.sqrt(64)
    return {
        "bn_gamma": jnp.ones((f2,), jnp.float32),
        "bn_beta": jnp.zeros((f2,), jnp.float32),
        "W1": jax.random.uniform(k1, (64, f2), jnp.float32, -bound1, bound1),
        "b1": jax.random.uniform(k2, (64,), jnp.float32, -bound1, bound1),
        "prelu_a": jnp.float32(0.25),
        "W2": jax.random.uniform(k3, (features, 64), jnp.float32, -bound2, bound2),
        "b2": jax.random.uniform(k4, (features,), jnp.float32, -bound2, bound2),
    }


def channel_reweight_ref(x, params):
    """Pure-JAX reference mirroring the PyTorch forward (train-mode BN, two-pass std)."""
    B, C, H, W = x.shape
    mean = x.mean(axis=(2, 3))
    std = jnp.sqrt(((x - mean[:, :, None, None]) ** 2).sum((2, 3)) / (H * W - 1))
    stats = jnp.concatenate([mean, std], axis=1)                   # [B, 2C]
    bm = stats.mean(axis=0)
    bv = ((stats - bm) ** 2).mean(axis=0)
    h = (stats - bm) / jnp.sqrt(bv + 1e-5) * params["bn_gamma"] + params["bn_beta"]
    h = h @ params["W1"].T + params["b1"]
    h = jnp.where(h > 0, h, params["prelu_a"] * h)
    h = h @ params["W2"].T + params["b2"]
    w = jnp.where(h > 20.0, h, jnp.log1p(jnp.exp(jnp.minimum(h, 20.0))))
    return x * w[:, :, None, None]


if __name__ == "__main__":
    key = jax.random.PRNGKey(0)
    fn = jax.jit(channel_reweight)

    # (B, C, H, W):
    #   base exact-tile case; partial row+lane blocks; multi-HW-step accumulation;
    #   multi-BC-block + partial edge blocks + masked HW tail.
    cases = [(2, 4, 16, 16), (2, 3, 20, 20), (2, 4, 64, 64), (4, 40, 48, 48)]
    for idx, (B, C, H, W) in enumerate(cases):
        kp, kx = jax.random.split(jax.random.fold_in(key, idx))
        params = init_params(kp, C)
        base = jax.random.normal(kx, (B, C, H, W), jnp.float32)
        # Distinct per-(b,c) scales keep BatchNorm batch-variances O(1), so the
        # f32-reassociation difference (one-pass vs two-pass variance) stays tiny.
        scale = (1.0 + 0.5 * jnp.arange(B * C, dtype=jnp.float32)).reshape(B, C, 1, 1)
        x = base * scale

        out = jax.block_until_ready(fn(x, params))
        ref = channel_reweight_ref(x, params)

        assert out.shape == x.shape and out.dtype == x.dtype
        # 1e-3 tolerance: f32 rounding differences (one-pass vs two-pass variance,
        # different reduction association) amplified by BN's rsqrt(var + eps).
        assert jnp.allclose(out, ref, rtol=1e-3, atol=1e-3), (
            idx, float(jnp.max(jnp.abs(out - ref))))

    print("KERNEL_OK")
</pallas_src>

<mosaic_0001>
module attributes {stable_mosaic.version = 11 : i64} {
  func.func @kernel(%arg0: i32, %arg1: i32, %arg2: memref<8x256xf32, #tpu.memory_space<vmem>>, %arg3: memref<8x128xf32, #tpu.memory_space<vmem>>, %arg4: memref<8x128xf32, #tpu.memory_space<vmem>>) attributes {dimension_semantics = [#tpu.dimension_semantics<parallel>, #tpu.dimension_semantics<arbitrary>], iteration_bounds = array<i64: 1, 1>, scalar_prefetch = 0 : i64, scratch_operands = 0 : i64, tpu.core_type = #tpu.core_type<tc>, window_params = [{transform_indices = @transform_0, window_bounds = array<i64: 8, 256>}, {transform_indices = @transform_1, window_bounds = array<i64: 8, 128>}, {transform_indices = @transform_2, window_bounds = array<i64: 8, 128>}]} {
    %cst = arith.constant 0.000000e+00 : f32
    %0 = vector.broadcast %cst : f32 to vector<8x128xf32>
    %cst_0 = arith.constant 0.000000e+00 : f32
    %1 = vector.broadcast %cst_0 : f32 to vector<8x128xf32>
    %c0 = arith.constant 0 : index
    %c0_1 = arith.constant 0 : index
    %2 = vector.load %arg2[%c0, %c0_1] : memref<8x256xf32, #tpu.memory_space<vmem>>, vector<8x128xf32>
    %3 = arith.addf %0, %2 : vector<8x128xf32>
    %4 = arith.mulf %2, %2 : vector<8x128xf32>
    %5 = arith.addf %1, %4 : vector<8x128xf32>
    %c0_2 = arith.constant 0 : index
    %c128 = arith.constant 128 : index
    %6 = vector.load %arg2[%c0_2, %c128] : memref<8x256xf32, #tpu.memory_space<vmem>>, vector<8x128xf32>
    %7 = arith.addf %3, %6 : vector<8x128xf32>
    %8 = arith.mulf %6, %6 : vector<8x128xf32>
    %9 = arith.addf %5, %8 : vector<8x128xf32>
    %c0_3 = arith.constant 0 : index
    %c0_4 = arith.constant 0 : index
    %10 = vector.load %arg3[%c0_3, %c0_4] : memref<8x128xf32, #tpu.memory_space<vmem>>, vector<8x128xf32>
    tpu.vector_store %arg3[%c0_3, %c0_4], %7 {strides = array<i32>} : memref<8x128xf32, #tpu.memory_space<vmem>>, vector<8x128xf32>,
    %c0_5 = arith.constant 0 : index
    %c0_6 = arith.constant 0 : index
    %11 = vector.load %arg4[%c0_5, %c0_6] : memref<8x128xf32, #tpu.memory_space<vmem>>, vector<8x128xf32>
    tpu.vector_store %arg4[%c0_5, %c0_6], %9 {strides = array<i32>} : memref<8x128xf32, #tpu.memory_space<vmem>>, vector<8x128xf32>,
    return
  }
  func.func @transform_0(%arg0: i32, %arg1: i32) -> (i32, i32) {
    %c0_i32 = arith.constant 0 : i32
    return %arg0, %arg1 : i32, i32
  }
  func.func @transform_1(%arg0: i32, %arg1: i32) -> (i32, i32) {
    %c0_i32 = arith.constant 0 : i32
    %c0_i32_0 = arith.constant 0 : i32
    return %arg0, %c0_i32 : i32, i32
  }
  func.func @transform_2(%arg0: i32, %arg1: i32) -> (i32, i32) {
    %c0_i32 = arith.constant 0 : i32
    %c0_i32_0 = arith.constant 0 : i32
    return %arg0, %c0_i32 : i32, i32
  }
}

module attributes {stable_mosaic.version = 11 : i64} {
  func.func @_reweight_kernel(%arg0: i32, %arg1: i32, %arg2: memref<8x1xf32, #tpu.memory_space<vmem>>, %arg3: memref<8x256xf32, #tpu.memory_space<vmem>>, %arg4: memref<8x256xf32, #tpu.memory_space<vmem>>) attributes {dimension_semantics = [#tpu.dimension_semantics<parallel>, #tpu.dimension_semantics<parallel>], iteration_bounds = array<i64: 1, 1>, scalar_prefetch = 0 : i64, scratch_operands = 0 : i64, tpu.core_type = #tpu.core_type<tc>, window_params = [{transform_indices = @transform_0, window_bounds = array<i64: 8, 1>}, {transform_indices = @transform_1, window_bounds = array<i64: 8, 256>}, {transform_indices = @transform_2, window_bounds = array<i64: 8, 256>}]} {
    %c0 = arith.constant 0 : index
    %c0_0 = arith.constant 0 : index
    %0 = vector.load %arg3[%c0, %c0_0] : memref<8x256xf32, #tpu.memory_space<vmem>>, vector<8x256xf32>
    %c0_1 = arith.constant 0 : index
    %c0_2 = arith.constant 0 : index
    %1 = vector.load %arg2[%c0_1, %c0_2] : memref<8x1xf32, #tpu.memory_space<vmem>>, vector<8x1xf32>
    %2 = vector.broadcast %1 : vector<8x1xf32> to vector<8x256xf32>
    %3 = arith.mulf %0, %2 : vector<8x256xf32>
    %c0_3 = arith.constant 0 : index
    %c0_4 = arith.constant 0 : index
    %4 = vector.load %arg4[%c0_3, %c0_4] : memref<8x256xf32, #tpu.memory_space<vmem>>, vector<8x256xf32>
    tpu.vector_store %arg4[%c0_3, %c0_4], %3 {strides = array<i32>} : memref<8x256xf32, #tpu.memory_space<vmem>>, vector<8x256xf32>,
    return
  }
  func.func @transform_0(%arg0: i32, %arg1: i32) -> (i32, i32) {
    %c0_i32 = arith.constant 0 : i32
    %c0_i32_0 = arith.constant 0 : i32
    return %arg0, %c0_i32 : i32, i32
  }
  func.func @transform_1(%arg0: i32, %arg1: i32) -> (i32, i32) {
    %c0_i32 = arith.constant 0 : i32
    return %arg0, %arg1 : i32, i32
  }
  func.func @transform_2(%arg0: i32, %arg1: i32) -> (i32, i32) {
    %c0_i32 = arith.constant 0 : i32
    return %arg0, %arg1 : i32, i32
  }
}

</mosaic_0001>

<bundles_post_ra>
// kernel: channel_reweight.2
= control target key start
LH: loop header
LB: loop body
LE: loop exit
PB: predicated region body
PF: predicated region fallthrough
CT: control target
= control target key end

     0   :  { %s55_s0 = inlined_call_operand.vmem [shape: f32[8,256], index: 0, kind: input, shape index: {}]   ;;  %s56_s1 = inlined_call_operand.vmem [shape: f32[8,128], index: 1, kind: output, shape index: {0}]   ;;  %s57_s2 = inlined_call_operand.vmem [shape: f32[8,128], index: 2, kind: output, shape index: {1}]  }
   0x1   :  { %v10_v0 = vld [vmem:[%s55_s0] sm:$0xff]  ;;  %v14_v1 = vld [vmem:[%s55_s0 + $0x8] sm:$0xff] }
   0x2   :  { %v15_v2 = vadd.f32 %v14_v1, %v10_v0  ;;  %v12_v3 = vmul.f32 %v10_v0, %v10_v0  ;;  %v16_v4 = vmul.f32 %v14_v1, %v14_v1 }
   0x4   :  { %18 = vst [vmem:[%s56_s1] sm:$0xff] %v15_v2  ;;  %v17_v5 = vadd.f32 %v16_v4, %v12_v3 }
   0x6   :  { %19 = vst [vmem:[%s57_s2] sm:$0xff] %v17_v5 }

// kernel: channel_reweight.3
= control target key start
LH: loop header
LB: loop body
LE: loop exit
PB: predicated region body
PF: predicated region fallthrough
CT: control target
= control target key end

     0   :  { %v29_v0 = vmov 0   ;;  %s60_s0 = inlined_call_operand.vmem [shape: f32[8,1], index: 0, kind: input, shape index: {}]   ;;  %s61_s1 = inlined_call_operand.vmem [shape: f32[8,256], index: 1, kind: input, shape index: {}]   ;;  %s62_s2 = inlined_call_operand.vmem [shape: f32[8,256], index: 2, kind: output, shape index: {}]  }
   0x1   :  { %28 = vset.pattern.permute.xlu0 %v29_v0  ;;  %v13_v1 = vld [vmem:[%s60_s0] sm:$0xff]  ;;  %v12_v3 = vld [vmem:[%s61_s1 + $0x8] sm:$0xff] }
   0x2   :  { %16 = vperm.xlu0 %28, %v13_v1   ;;  %v11_v2 = vld [vmem:[%s61_s1] sm:$0xff] }
  0x81   :  { %v17_v4 = vpop.permute.xlu0 %16 }
  0x82   :  { %v19_v5 = vmul.f32 %v17_v4, %v11_v2  ;;  %v20_v6 = vmul.f32 %v17_v4, %v12_v3 }
  0x84   :  { %21 = vst [vmem:[%s62_s2] sm:$0xff] %v19_v5  ;;  %22 = vst [vmem:[%s62_s2 + $0x8] sm:$0xff] %v20_v6 }

</bundles_post_ra>
